<compile_context>
chip_gen: v5e
topology: v5e:2x2
jax: 0.10.0
libtpu: 0.0.40
codegen_flags: <defaults>
</compile_context>

<pallas_src>
import jax
import jax.numpy as jnp
from jax.experimental import pallas as pl
from jax.experimental.pallas import tpu as pltpu


def _euclidean_log_kernel(x_ref, y_ref, o_ref):
    # Elementwise hot path on the VPU: log_x(y) = y - x.
    o_ref[...] = y_ref[...] - x_ref[...]


def euclidean_logarithm(
    x: jax.Array,
    y: jax.Array,
    *,
    lane_width: int = 1024,
    block_rows: int = 512,
    min_pallas_elems: int = 1 << 14,
) -> jax.Array:
    """Pallas implementation of EuclideanLogarithm.forward: returns y - x.

    x, y: arrays of identical shape and dtype (..., dim).
    """
    assert x.shape == y.shape, "x and y must have identical shapes"
    assert x.dtype == y.dtype, "x and y must have identical dtypes"

    orig_shape = x.shape
    total = int(x.size)

    # Tiny inputs: kernel launch + per-step overhead dwarfs the ~KiB of data
    # movement; XLA's fused elementwise sub is strictly faster here.
    if total < min_pallas_elems:
        return y - x

    # Lane-dense reshape: (rows, C) with C a large multiple of 128.
    C = int(lane_width)
    xf = x.reshape(-1)
    yf = y.reshape(-1)
    pad = (-total) % C
    if pad:
        xf = jnp.pad(xf, (0, pad))
        yf = jnp.pad(yf, (0, pad))
    rows = (total + pad) // C
    x2 = xf.reshape(rows, C)
    y2 = yf.reshape(rows, C)

    # Sub-32-bit dtypes pack along sublanes (bf16 vreg is (16,128), int8 (32,128));
    # keep the row-tile a multiple of the packed sublane count.
    itemsize = jnp.dtype(x.dtype).itemsize
    sub = 8 * max(1, 4 // itemsize)

    tr = min(block_rows, rows)
    if tr == rows and rows >= 2 * sub:
        # Keep >= 2 grid steps so both v7x TensorCores get work on the
        # "parallel" axis.
        tr = ((pl.cdiv(rows, 2) + sub - 1) // sub) * sub
    elif tr < rows:
        tr = min(((tr + sub - 1) // sub) * sub, rows)

    grid = (pl.cdiv(rows, tr),)

    out2 = pl.pallas_call(
        _euclidean_log_kernel,
        out_shape=jax.ShapeDtypeStruct((rows, C), x.dtype),
        grid=grid,
        in_specs=[
            pl.BlockSpec((tr, C), lambda i: (i, 0)),
            pl.BlockSpec((tr, C), lambda i: (i, 0)),
        ],
        out_specs=pl.BlockSpec((tr, C), lambda i: (i, 0)),
        compiler_params=pltpu.CompilerParams(
            dimension_semantics=("parallel",),
            # Headroom for 2-4 MiB tiles on every generation (v5e's scoped
            # default is only 16 MiB; 32 MiB matches v7x's default).
            vmem_limit_bytes=32 * 1024 * 1024,
        ),
    )(x2, y2)

    outf = out2.reshape(-1)
    if pad:
        outf = outf[:total]
    return outf.reshape(orig_shape)


if __name__ == "__main__":
    key = jax.random.PRNGKey(0)
    k1, k2, k3, k4, k5, k6 = jax.random.split(key, 6)

    # Case 1: canonical small module shape (batch=2, seq=8, dim=32).
    # Force the Pallas path once (min_pallas_elems=0) so the kernel itself is
    # exercised, and also check the default (fallback) path.
    batch, seq, dim = 2, 8, 32
    x_s = jax.random.normal(k1, (batch, seq, dim), dtype=jnp.float32)
    y_s = jax.random.normal(k2, (batch, seq, dim), dtype=jnp.float32)
    ref_s = y_s - x_s

    out_s_kernel = jax.block_until_ready(
        euclidean_logarithm(x_s, y_s, min_pallas_elems=0))
    out_s_default = jax.block_until_ready(euclidean_logarithm(x_s, y_s))
    assert out_s_kernel.shape == ref_s.shape and out_s_kernel.dtype == ref_s.dtype
    assert jnp.allclose(out_s_kernel, ref_s, atol=1e-6, rtol=1e-6)
    assert jnp.allclose(out_s_default, ref_s, atol=1e-6, rtol=1e-6)

    # Case 2: moderate shape exercising the lane-dense multi-tile path
    # (flattens to 96 rows x 1024 lanes -> 2 parallel grid steps).
    x_m = jax.random.normal(k3, (4, 256, 96), dtype=jnp.float32)
    y_m = jax.random.normal(k4, (4, 256, 96), dtype=jnp.float32)
    out_m = jax.block_until_ready(euclidean_logarithm(x_m, y_m))
    assert jnp.allclose(out_m, y_m - x_m, atol=1e-6, rtol=1e-6)

    # Case 3: odd element count exercising the pad/slice tail path.
    x_o = jax.random.normal(k5, (3, 33, 37), dtype=jnp.float32)
    y_o = jax.random.normal(k6, (3, 33, 37), dtype=jnp.float32)
    out_o = jax.block_until_ready(
        euclidean_logarithm(x_o, y_o, min_pallas_elems=0))
    assert jnp.allclose(out_o, y_o - x_o, atol=1e-6, rtol=1e-6)

    print("KERNEL_OK")
</pallas_src>

<mosaic_0001>
module attributes {stable_mosaic.version = 11 : i64} {
  func.func @_euclidean_log_kernel(%arg0: i32, %arg1: memref<1x1024xf32, #tpu.memory_space<vmem>>, %arg2: memref<1x1024xf32, #tpu.memory_space<vmem>>, %arg3: memref<1x1024xf32, #tpu.memory_space<vmem>>) attributes {dimension_semantics = [#tpu.dimension_semantics<parallel>], iteration_bounds = array<i64: 1>, scalar_prefetch = 0 : i64, scratch_operands = 0 : i64, tpu.core_type = #tpu.core_type<tc>, window_params = [{transform_indices = @transform_0, window_bounds = array<i64: 1, 1024>}, {transform_indices = @transform_1, window_bounds = array<i64: 1, 1024>}, {transform_indices = @transform_2, window_bounds = array<i64: 1, 1024>}]} {
    %c0 = arith.constant 0 : index
    %c0_0 = arith.constant 0 : index
    %0 = vector.load %arg2[%c0, %c0_0] : memref<1x1024xf32, #tpu.memory_space<vmem>>, vector<1x1024xf32>
    %c0_1 = arith.constant 0 : index
    %c0_2 = arith.constant 0 : index
    %1 = vector.load %arg1[%c0_1, %c0_2] : memref<1x1024xf32, #tpu.memory_space<vmem>>, vector<1x1024xf32>
    %2 = arith.subf %0, %1 : vector<1x1024xf32>
    %c0_3 = arith.constant 0 : index
    %c0_4 = arith.constant 0 : index
    %3 = vector.load %arg3[%c0_3, %c0_4] : memref<1x1024xf32, #tpu.memory_space<vmem>>, vector<1x1024xf32>
    tpu.vector_store %arg3[%c0_3, %c0_4], %2 {strides = array<i32>} : memref<1x1024xf32, #tpu.memory_space<vmem>>, vector<1x1024xf32>,
    return
  }
  func.func @transform_0(%arg0: i32) -> (i32, i32) {
    %c0_i32 = arith.constant 0 : i32
    %c0_i32_0 = arith.constant 0 : i32
    return %arg0, %c0_i32 : i32, i32
  }
  func.func @transform_1(%arg0: i32) -> (i32, i32) {
    %c0_i32 = arith.constant 0 : i32
    %c0_i32_0 = arith.constant 0 : i32
    return %arg0, %c0_i32 : i32, i32
  }
  func.func @transform_2(%arg0: i32) -> (i32, i32) {
    %c0_i32 = arith.constant 0 : i32
    %c0_i32_0 = arith.constant 0 : i32
    return %arg0, %c0_i32 : i32, i32
  }
}

</mosaic_0001>

<bundles_post_ra>
// kernel: tpu_custom_call.1
= control target key start
LH: loop header
LB: loop body
LE: loop exit
PB: predicated region body
PF: predicated region fallthrough
CT: control target
= control target key end

     0   :  { %7 = vsyncpa [#allocation3], 0  ;;  %s170_s0 = inlined_call_operand.hbm [shape: f32[1,1024], index: 0, kind: input, shape index: {}]   ;;  %s171_s1 = inlined_call_operand.hbm [shape: f32[1,1024], index: 1, kind: input, shape index: {}]   ;;  %s172_s2 = inlined_call_operand.hbm [shape: f32[1,1024], index: 2, kind: output, shape index: {}]  }
   0x1   :  { %8 = vsyncpa [#allocation6], 0 }
   0x2   :  { %9 = vsyncpa [#allocation4], 0  ;;  %s15_s11 = sshll.u32 %s170_s0, 4  ;;  %s143_s12 = smov [#allocation2]   ;;  %s16_s11 = int_to_ptr.hbm [resolvable:$true] %s15_s11 }
   0x3   :  { %s17_s13 = sshll.u32 %s143_s12, 4  ;;  %s26_s16 = sshll.u32 %s171_s1, 4  ;;  %s18_s13 = int_to_ptr.vmem [resolvable:$true] %s17_s13  ;;  %s27_s16 = int_to_ptr.hbm [resolvable:$true] %s26_s16 }
   0x4   :  { %20 = dma.hbm_to_vmem [thread:$0]  %s16_s11, 128, %s18_s13, [#allocation3]  }
   0x5   :  { %s144_s17 = smov [#allocation5]  }
   0x6   :  { %s28_s18 = sshll.u32 %s144_s17, 4  ;;  %s29_s18 = int_to_ptr.vmem [resolvable:$true] %s28_s18 }
   0x7   :  { %31 = dma.hbm_to_vmem [thread:$0]  %s27_s16, 128, %s29_s18, [#allocation6]  }
   0x8   :  { %137 = dma.done.wait [#allocation3], 128  }
   0x9   :  { %138 = vsyncadd [#allocation3], 4294967168 }
   0xa   :  { %139 = dma.done.wait [#allocation6], 128  }
   0xb   :  { %140 = vsyncadd [#allocation6], 4294967168  ;;  %s145_s19 = smov [#allocation7]   ;;  %s51_s22 = sshll.u32 %s172_s2, 4  ;;  %v40_v0 = vld [vmem:[#allocation5] sm:$0xff]  ;;  %v41_v1 = vld [vmem:[#allocation2] sm:$0xff]  ;;  %s52_s22 = int_to_ptr.hbm [resolvable:$true] %s51_s22 }
   0xc   :  { %s49_s0 = sshll.u32 %s145_s19, 4  ;;  %v42_v2 = vsub.f32 %v40_v0, %v41_v1  ;;  %s50_s0 = int_to_ptr.vmem [resolvable:$true] %s49_s0 }
   0xe   :  { %43 = vst [vmem:[#allocation7] sm:$0xff] %v42_v2 }
   0xf   :  { %54 = dma.vmem_to_hbm [thread:$0]  %s50_s0, 128, %s52_s22, [#allocation4]  }
  0x10   :  { %141 = dma.done.wait [#allocation4], 128  }
  0x11   :  { %142 = vsyncadd [#allocation4], 4294967168 }
  0x12   :  { %59 = vsyncpa [#allocation3], 1 }
  0x13   :  { %60 = vsyncpa [#allocation6], 1 }
  0x14   :  { %61 = vsyncpa [#allocation4], 1 }

</bundles_post_ra>
